<compile_context>
chip_gen: v6e
topology: v6e:2x2x1
jax: 0.10.0
libtpu: 0.0.40
codegen_flags: <defaults>
</compile_context>

<pallas_src>
import functools

import jax
import jax.numpy as jnp
from jax import lax
from jax.experimental import pallas as pl
from jax.experimental.pallas import tpu as pltpu


def _round_up(x, m):
    return (x + m - 1) // m * m


def _vmem_limit_bytes():
    # Generation-aware budget: ~3/4 of physical VMEM, capped at 100 MiB.
    # (v5e/v6e: 128 MiB -> 96 MiB, v7x: 64 MiB/TC -> 48 MiB.)
    try:
        cap = int(pltpu.get_tpu_info().vmem_capacity_bytes)
    except Exception:
        cap = 64 * 1024 * 1024
    return max(32 * 1024 * 1024, min(cap * 3 // 4, 100 * 1024 * 1024))


_VMEM_LIMIT = _vmem_limit_bytes()


# ----------------------------------------------------------------------------
# Pallas kernels
# ----------------------------------------------------------------------------
def _matmul_bn_kernel(a_ref, b_ref, sb_ref, o_ref, *, relu):
    # bf16 x bf16 -> f32 on the MXU; fused scale/bias (+ReLU) epilogue.
    # b (full K x N weight slab) and sb are VMEM-resident across the M grid.
    acc = jnp.dot(a_ref[...], b_ref[...], preferred_element_type=jnp.float32)
    y = acc * sb_ref[0:1, :] + sb_ref[1:2, :]
    if relu:
        y = jnp.maximum(y, 0.0)
    o_ref[...] = y.astype(o_ref.dtype)


def _matmul_bn_res_kernel(a_ref, b_ref, sb_ref, id_ref, o_ref):
    # conv3 epilogue: scale/bias + residual add + ReLU, all fused.
    acc = jnp.dot(a_ref[...], b_ref[...], preferred_element_type=jnp.float32)
    y = acc * sb_ref[0:1, :] + sb_ref[1:2, :] + id_ref[...].astype(jnp.float32)
    o_ref[...] = jnp.maximum(y, 0.0).astype(o_ref.dtype)


def _conv3x3_s1_kernel(x_ref, w_ref, sb_ref, o_ref, acc_ref,
                       *, th, wp, wo, cin, relu):
    # Direct 3x3 / stride-1 / pad-1 conv, no im2col:
    #   x_ref:   (1, Hp*Wp, Cin) row-flattened zero-padded image (resident per n)
    #   w_ref:   (9*Cin, Cout)   resident weight slab, tap-major rows
    #   sb_ref:  (2, Cout)       packed [scale; bias]
    #   o_ref:   (1, th, Wo, Cout)
    #   acc_ref: (th*Wp, Cout)   f32 accumulator (keeps padded W columns)
    i = pl.program_id(1)
    base = i * (th * wp)  # wp is a multiple of 8 -> every load start is aligned
    for t in range(9):
        dh, dw = divmod(t, 3)
        start = pl.multiple_of(base + dh * wp, 8)
        a_full = x_ref[0, pl.ds(start, th * wp + 8), :]   # aligned over-read
        a = a_full[dw:dw + th * wp, :]                     # static W-tap shift
        d = jnp.dot(a, w_ref[t * cin:(t + 1) * cin, :],
                    preferred_element_type=jnp.float32)
        if t == 0:
            acc_ref[...] = d
        else:
            acc_ref[...] += d
    scale = sb_ref[0:1, :]
    bias = sb_ref[1:2, :]
    for r in range(th):  # crop the padded W columns row by row (VMEM only)
        y = acc_ref[r * wp:r * wp + wo, :] * scale + bias
        if relu:
            y = jnp.maximum(y, 0.0)
        o_ref[0, r] = y.astype(o_ref.dtype)


def _maxpool_kernel(x_ref, o_ref):
    # x_ref: (1, Ho+1, 2, Wo+1, 2*C) pair-grouped padded input
    # o_ref: (1, Ho, Wo, C)
    _, Ho, Wo, C = o_ref.shape

    def body(ho, a):                     # a == padded row 2*ho (carried forward)
        b = x_ref[0, ho, 1, :, :]        # padded row 2*ho + 1
        c = x_ref[0, ho + 1, 0, :, :]    # padded row 2*ho + 2
        m = jnp.maximum(jnp.maximum(a, b), c)      # max over the 3 H taps
        # W taps: pair element 0/1 live in lane halves [0:C]/[C:2C]; third tap
        # is the next pair's element 0 (shift by one along the Wo+1 axis).
        row = jnp.maximum(jnp.maximum(m[:Wo, :C], m[:Wo, C:]), m[1:, :C])
        o_ref[0, ho, :, :] = row
        return c                         # becomes tap `a` of the next row

    lax.fori_loop(0, Ho, body, x_ref[0, 0, 0, :, :], unroll=4)


def _avgpool_kernel(x_ref, o_ref, *, inv_hw):
    # x_ref: (1, HW, tc) -> o_ref: (1, tc); accumulate in f32, emit bf16.
    o_ref[...] = (jnp.sum(x_ref[...].astype(jnp.float32), axis=1) * inv_hw
                  ).astype(o_ref.dtype)


# ----------------------------------------------------------------------------
# Wrappers around pallas_call
# ----------------------------------------------------------------------------
def matmul_scale_bias(a, b, sb, identity=None, relu=True,
                      out_dtype=jnp.bfloat16, tm=None):
    """out = act((a @ b) * scale + bias [+ identity]); a:(M,K) b:(K,N) sb:(2,N).

    The full (K, N) weight slab (max ~4.7 MiB bf16 in ResNet-50) and the packed
    scale/bias stay VMEM-resident; only the activation streams over the M grid.
    """
    a = a.astype(jnp.bfloat16)
    b = b.astype(jnp.bfloat16)
    M, K = a.shape
    N = b.shape[1]

    if tm is None:
        # Wide-M tiles amortize the masked (<128-lane) stores of narrow-N layers
        # and the per-step pipeline overhead; everything still fits <48 MiB.
        tm = 1024 if N < 128 else 512
    tm = min(tm, _round_up(M, 8))
    grid = (pl.cdiv(M, tm),)

    in_specs = [
        pl.BlockSpec((tm, K), lambda i: (i, 0)),   # streamed activation block
        pl.BlockSpec((K, N), lambda i: (0, 0)),    # resident weight slab
        pl.BlockSpec((2, N), lambda i: (0, 0)),    # resident packed scale/bias
    ]
    args = [a, b, sb]
    if identity is None:
        kernel = functools.partial(_matmul_bn_kernel, relu=relu)
    else:
        kernel = _matmul_bn_res_kernel
        in_specs.append(pl.BlockSpec((tm, N), lambda i: (i, 0)))
        args.append(identity.astype(jnp.bfloat16))

    return pl.pallas_call(
        kernel,
        out_shape=jax.ShapeDtypeStruct((M, N), out_dtype),
        grid=grid,
        in_specs=in_specs,
        out_specs=pl.BlockSpec((tm, N), lambda i: (i, 0)),
        compiler_params=pltpu.CompilerParams(
            dimension_semantics=("parallel",),
            vmem_limit_bytes=_VMEM_LIMIT),
    )(*args)


def _pick_row_tile(ho):
    """Largest divisor of Ho that is <= 16 (full image if small)."""
    if ho <= 16:
        return ho
    for th in range(16, 0, -1):
        if ho % th == 0:
            return th
    return ho


def _conv3x3_s1_direct(x, p, relu=True):
    """3x3/stride-1/pad-1 conv + folded BN without im2col (in-kernel taps)."""
    N, H, W, Cin = x.shape
    Cout = p["wm"].shape[1]
    Ho, Wo = H, W
    Wp = _round_up(Wo + 2, 8)       # aligned row pitch (left pad 1, rest right)
    Hp = Ho + 3                     # top pad 1, bottom pad 2 (covers over-reads)
    xp = jnp.pad(x, ((0, 0), (1, Hp - Ho - 1), (1, Wp - Wo - 1), (0, 0)))
    Lp = Hp * Wp
    xflat = xp.reshape(N, Lp, Cin)  # contiguous reshape, free

    th = _pick_row_tile(Ho)
    grid = (N, Ho // th)
    kernel = functools.partial(_conv3x3_s1_kernel, th=th, wp=Wp, wo=Wo,
                               cin=Cin, relu=relu)
    return pl.pallas_call(
        kernel,
        out_shape=jax.ShapeDtypeStruct((N, Ho, Wo, Cout), jnp.bfloat16),
        grid=grid,
        in_specs=[
            pl.BlockSpec((1, Lp, Cin), lambda n, i: (n, 0, 0)),      # resident/n
            pl.BlockSpec((9 * Cin, Cout), lambda n, i: (0, 0)),      # resident
            pl.BlockSpec((2, Cout), lambda n, i: (0, 0)),            # resident
        ],
        out_specs=pl.BlockSpec((1, th, Wo, Cout), lambda n, i: (n, i, 0, 0)),
        scratch_shapes=[pltpu.VMEM((th * Wp, Cout), jnp.float32)],
        compiler_params=pltpu.CompilerParams(
            dimension_semantics=("parallel", "arbitrary"),
            vmem_limit_bytes=_VMEM_LIMIT),
    )(xflat, p["wm"], p["sb"])


def maxpool_3x3_s2(x):
    """MaxPool2d(kernel=3, stride=2, padding=1) on NHWC, no 9x tap stack."""
    N, H, W, C = x.shape
    Ho = (H - 1) // 2 + 1
    Wo = (W - 1) // 2 + 1
    Hp, Wp = 2 * Ho + 2, 2 * Wo + 2
    xp = jnp.pad(x, ((0, 0), (1, Hp - H - 1), (1, Wp - W - 1), (0, 0)),
                 constant_values=-jnp.inf)
    # Group padded rows/cols in pairs; the W pair merges into the lane dim so
    # all 9 window taps become plain (un-strided) slices inside the kernel.
    xr = xp.reshape(N, Ho + 1, 2, Wo + 1, 2 * C)
    return pl.pallas_call(
        _maxpool_kernel,
        out_shape=jax.ShapeDtypeStruct((N, Ho, Wo, C), x.dtype),
        grid=(N,),
        in_specs=[pl.BlockSpec((1, Ho + 1, 2, Wo + 1, 2 * C),
                               lambda n: (n, 0, 0, 0, 0))],
        out_specs=pl.BlockSpec((1, Ho, Wo, C), lambda n: (n, 0, 0, 0)),
        compiler_params=pltpu.CompilerParams(
            dimension_semantics=("parallel",),
            vmem_limit_bytes=_VMEM_LIMIT),
    )(xr)


def global_avgpool(x):
    """AdaptiveAvgPool2d(1) + flatten(1) on NHWC -> (N, C) bf16."""
    N, H, W, C = x.shape
    xr = x.reshape(N, H * W, C)
    tc = 512 if C % 512 == 0 else (128 if C % 128 == 0 else C)
    return pl.pallas_call(
        functools.partial(_avgpool_kernel, inv_hw=1.0 / (H * W)),
        out_shape=jax.ShapeDtypeStruct((N, C), jnp.bfloat16),
        grid=(N, pl.cdiv(C, tc)),
        in_specs=[pl.BlockSpec((1, H * W, tc), lambda n, j: (n, 0, j))],
        out_specs=pl.BlockSpec((1, tc), lambda n, j: (n, j)),
        compiler_params=pltpu.CompilerParams(
            dimension_semantics=("parallel", "parallel"),
            vmem_limit_bytes=_VMEM_LIMIT),
    )(xr)


def conv2d_bn(x, p, stride=1, padding=0, relu=True, identity=None):
    """Conv2d(bias=False) + folded BN; optional fused residual add + ReLU.

    x: NHWC bf16, p["wm"]: (k*k*Cin, Cout) bf16, p["sb"]: (2, Cout) f32.
    When `identity` is given the matmul epilogue computes relu(conv_bn(x)+id).
    """
    N, H, W, Cin = x.shape
    k = p["k"]
    Cout = p["wm"].shape[1]
    Ho = (H + 2 * padding - k) // stride + 1
    Wo = (W + 2 * padding - k) // stride + 1

    if k == 3 and stride == 1 and padding == 1 and identity is None:
        return _conv3x3_s1_direct(x, p, relu=relu)

    if k == 1 and padding == 0:
        # TODO(synk): select the even rows/cols inside the kernel (pair-grouped
        # lanes) for the 3 stride-2 downsample convs instead of this HBM gather.
        xs = x if stride == 1 else x[:, :stride * (Ho - 1) + 1:stride,
                                     :stride * (Wo - 1) + 1:stride, :]
        patches = xs.reshape(N * Ho * Wo, Cin)
    else:
        # TODO(synk): stream the k*k taps out of the padded activation in-kernel
        # for the 7x7 stem and the 3 stride-2 3x3 convs too (small layers).
        xp = jnp.pad(x, ((0, 0), (padding, padding), (padding, padding), (0, 0)))
        cols = [xp[:, dh:dh + stride * (Ho - 1) + 1:stride,
                   dw:dw + stride * (Wo - 1) + 1:stride, :]
                for dh in range(k) for dw in range(k)]
        patches = jnp.concatenate(cols, axis=-1).reshape(N * Ho * Wo, k * k * Cin)

    id_flat = None if identity is None else identity.reshape(N * Ho * Wo, Cout)
    out = matmul_scale_bias(patches, p["wm"], p["sb"],
                            identity=id_flat, relu=relu)
    return out.reshape(N, Ho, Wo, Cout)


# ----------------------------------------------------------------------------
# Deterministic parameter construction (synthetic weights, ResNet-50 shapes).
# BN folded, conv weights pre-transposed/cast to bf16, scale/bias packed, ONCE.
# ----------------------------------------------------------------------------
def _make_conv_bn(key, cin, cout, k):
    kw_, kg, kb = jax.random.split(key, 3)
    fan_in = cin * k * k
    w = jax.random.normal(kw_, (cout, cin, k, k), jnp.float32) * (2.0 / fan_in) ** 0.5
    gamma = 1.0 + 0.1 * jax.random.normal(kg, (cout,), jnp.float32)
    beta = 0.1 * jax.random.normal(kb, (cout,), jnp.float32)
    running_mean = jnp.zeros((cout,), jnp.float32)
    running_var = jnp.ones((cout,), jnp.float32)
    eps = 1e-5
    scale = gamma / jnp.sqrt(running_var + eps)
    bias = beta - running_mean * scale
    wm = jnp.transpose(w, (2, 3, 1, 0)).reshape(k * k * cin, cout).astype(jnp.bfloat16)
    return {"wm": wm, "sb": jnp.stack([scale, bias], axis=0), "k": k}


def init_resnet50_params(key, nc=1000):
    keys = iter(jax.random.split(key, 256))
    params = {"conv1": _make_conv_bn(next(keys), 3, 64, 7)}

    layers_cfg = [(64, 3, 1), (128, 4, 2), (256, 6, 2), (512, 3, 2)]
    inplanes = 64
    layers = []
    for planes, nblocks, stride in layers_cfg:
        layer = []
        for b_i in range(nblocks):
            s = stride if b_i == 0 else 1
            blk = {
                "conv1": _make_conv_bn(next(keys), inplanes, planes, 1),
                "conv2": _make_conv_bn(next(keys), planes, planes, 3),
                "conv3": _make_conv_bn(next(keys), planes, planes * 4, 1),
                "stride": s,
            }
            if b_i == 0:  # stride != 1 or inplanes != planes*4 -> downsample
                blk["downsample"] = _make_conv_bn(next(keys), inplanes, planes * 4, 1)
            layer.append(blk)
            inplanes = planes * 4
        layers.append(layer)
    params["layers"] = layers

    kfc, kfb = next(keys), next(keys)
    fc_w = jax.random.normal(kfc, (nc, 2048), jnp.float32) * (1.0 / 2048) ** 0.5
    params["fc"] = {
        "wm": jnp.transpose(fc_w).astype(jnp.bfloat16),   # (2048, nc)
        "sb": jnp.stack([jnp.ones((nc,), jnp.float32),
                         0.01 * jax.random.normal(kfb, (nc,), jnp.float32)],
                        axis=0),
    }
    return params


# ----------------------------------------------------------------------------
# Forward pass (matches torchvision resnet50 v1.5 bottleneck structure)
# ----------------------------------------------------------------------------
def resnet50_forward(params, x_nchw):
    x = jnp.transpose(x_nchw, (0, 2, 3, 1)).astype(jnp.bfloat16)  # NCHW -> NHWC

    x = conv2d_bn(x, params["conv1"], stride=2, padding=3, relu=True)
    x = maxpool_3x3_s2(x)

    for layer in params["layers"]:
        for blk in layer:
            identity = x
            out = conv2d_bn(x, blk["conv1"], relu=True)
            out = conv2d_bn(out, blk["conv2"], stride=blk["stride"], padding=1,
                            relu=True)
            if "downsample" in blk:
                # TODO(synk): fuse the downsample matmul into the conv3 residual
                # epilogue for the 4 transition blocks (shared output tile).
                identity = conv2d_bn(x, blk["downsample"], stride=blk["stride"],
                                     padding=0, relu=False)
            # conv3 + BN + residual add + ReLU fused in one matmul epilogue.
            x = conv2d_bn(out, blk["conv3"], relu=False, identity=identity)

    feat = global_avgpool(x)                      # (N, 2048) bf16: pool+flatten
    logits = matmul_scale_bias(feat, params["fc"]["wm"], params["fc"]["sb"],
                               relu=False, out_dtype=jnp.float32)
    return logits


# ----------------------------------------------------------------------------
if __name__ == "__main__":
    key = jax.random.PRNGKey(0)
    k_param, k_input = jax.random.split(key)

    NC = 10  # small classifier head (module default is 1000)
    params = init_resnet50_params(k_param, nc=NC)

    # Small input consistent with the module: NCHW, 3 channels, 32x32 spatial.
    x = jax.random.normal(k_input, (2, 3, 32, 32), jnp.float32)

    out = resnet50_forward(params, x)
    out = jax.block_until_ready(out)

    assert out.shape == (2, NC), out.shape
    assert bool(jnp.all(jnp.isfinite(out)))
    print("KERNEL_OK")
</pallas_src>

<mosaic_0001>
module attributes {stable_mosaic.version = 11 : i64} {
  func.func @_matmul_bn_kernel(%arg0: i32, %arg1: memref<512x147xbf16, #tpu.memory_space<vmem>>, %arg2: memref<147x64xbf16, #tpu.memory_space<vmem>>, %arg3: memref<2x64xf32, #tpu.memory_space<vmem>>, %arg4: memref<512x64xbf16, #tpu.memory_space<vmem>>) attributes {dimension_semantics = [#tpu.dimension_semantics<parallel>], iteration_bounds = array<i64: 1>, scalar_prefetch = 0 : i64, scratch_operands = 0 : i64, tpu.core_type = #tpu.core_type<tc>, window_params = [{transform_indices = @transform_0, window_bounds = array<i64: 512, 147>}, {pipeline_mode = #tpu.pipeline_mode<synchronous>, transform_indices = @transform_1, window_bounds = array<i64: 147, 64>}, {pipeline_mode = #tpu.pipeline_mode<synchronous>, transform_indices = @transform_2, window_bounds = array<i64: 2, 64>}, {transform_indices = @transform_3, window_bounds = array<i64: 512, 64>}]} {
    %c0 = arith.constant 0 : index
    %c0_0 = arith.constant 0 : index
    %0 = vector.load %arg1[%c0, %c0_0] : memref<512x147xbf16, #tpu.memory_space<vmem>>, vector<512x147xbf16>
    %c0_1 = arith.constant 0 : index
    %c0_2 = arith.constant 0 : index
    %1 = vector.load %arg2[%c0_1, %c0_2] : memref<147x64xbf16, #tpu.memory_space<vmem>>, vector<147x64xbf16>
    %cst = arith.constant dense<0.000000e+00> : vector<512x64xf32>
    %2 = tpu.matmul %0, %1, %cst {dimension_numbers = #tpu.dot_dimension_numbers<[1], [0], [0], [1], [0, 0, 1, 1], [], []>} : vector<512x147xbf16>, vector<147x64xbf16>, vector<512x64xf32> -> vector<512x64xf32>
    %c0_3 = arith.constant 0 : index
    %c0_4 = arith.constant 0 : index
    %3 = vector.load %arg3[%c0_3, %c0_4] : memref<2x64xf32, #tpu.memory_space<vmem>>, vector<1x64xf32>
    %4 = vector.broadcast %3 : vector<1x64xf32> to vector<512x64xf32>
    %5 = arith.mulf %2, %4 : vector<512x64xf32>
    %c1 = arith.constant 1 : index
    %c0_5 = arith.constant 0 : index
    %6 = vector.load %arg3[%c1, %c0_5] : memref<2x64xf32, #tpu.memory_space<vmem>>, vector<1x64xf32>
    %7 = vector.broadcast %6 : vector<1x64xf32> to vector<512x64xf32>
    %8 = arith.addf %5, %7 : vector<512x64xf32>
    %cst_6 = arith.constant 0.000000e+00 : f32
    %9 = vector.broadcast %cst_6 : f32 to vector<512x64xf32>
    %10 = arith.maximumf %8, %9 : vector<512x64xf32>
    %11 = arith.truncf %10 : vector<512x64xf32> to vector<512x64xbf16>
    %c0_7 = arith.constant 0 : index
    %c0_8 = arith.constant 0 : index
    %12 = vector.load %arg4[%c0_7, %c0_8] : memref<512x64xbf16, #tpu.memory_space<vmem>>, vector<512x64xbf16>
    tpu.vector_store %arg4[%c0_7, %c0_8], %11 {strides = array<i32>} : memref<512x64xbf16, #tpu.memory_space<vmem>>, vector<512x64xbf16>,
    return
  }
  func.func @transform_0(%arg0: i32) -> (i32, i32) {
    %c0_i32 = arith.constant 0 : i32
    %c0_i32_0 = arith.constant 0 : i32
    return %arg0, %c0_i32 : i32, i32
  }
  func.func @transform_1(%arg0: i32) -> (i32, i32) {
    %c0_i32 = arith.constant 0 : i32
    %c0_i32_0 = arith.constant 0 : i32
    %c0_i32_1 = arith.constant 0 : i32
    return %c0_i32, %c0_i32_0 : i32, i32
  }
  func.func @transform_2(%arg0: i32) -> (i32, i32) {
    %c0_i32 = arith.constant 0 : i32
    %c0_i32_0 = arith.constant 0 : i32
    %c0_i32_1 = arith.constant 0 : i32
    return %c0_i32, %c0_i32_0 : i32, i32
  }
  func.func @transform_3(%arg0: i32) -> (i32, i32) {
    %c0_i32 = arith.constant 0 : i32
    %c0_i32_0 = arith.constant 0 : i32
    return %arg0, %c0_i32 : i32, i32
  }
}

</mosaic_0001>

<bundles_post_ra>
// kernel: tpu_custom_call.1
= control target key start
LH: loop header
LB: loop body
LE: loop exit
PB: predicated region body
PF: predicated region fallthrough
CT: control target
= control target key end

     0   :  { %v1727_v0 = vmov 0   ;;  %vm443_vm0 = vcmask 154624   ;;  %vm540_vm1 = vcmask 1040384   ;;  %vm541_vm2 = vcmask 1041408   ;;  %s2397_s1 = inlined_call_operand.vmem [shape: bf16[147,64], index: 1, kind: input, shape index: {}]   ;;  %s2398_s0 = inlined_call_operand.vmem [shape: bf16[512,147], index: 0, kind: input, shape index: {}]   ;;  %s2399_s2 = inlined_call_operand.vmem [shape: f32[2,64], index: 2, kind: input, shape index: {}]   ;;  %s2400_s3 = inlined_call_operand.vmem [shape: bf16[512,64], index: 3, kind: output, shape index: {}]  }
   0x1   :  { %547 = vmatprep.subr.bf16.mxu0 %v1727_v0  ;;  %1599 = vmatprep.subr.bf16.mxu1 %v1727_v0  ;;  %v1621_v1 = vld [vmem:[%s2397_s1 + $0x38] sm:$0xff]   ;;  %v1622_v2 = vld [vmem:[%s2397_s1 + $0x30] sm:$0xff]   ;;  %v1623_v3 = vld [vmem:[%s2397_s1 + $0x28] sm:$0xff]   ;;  %v1728_v10 = vmov 65535   ;;  %vm1294_vm3 = vcmask 519168  }
   0x2   :  { %548 = vmatpush1.bf16.msra.mxu0 %v1621_v1  ;;  %1609 = vmatpush1.bf16.msra.mxu1 %v1621_v1  ;;  %v1624_v4 = vld [vmem:[%s2397_s1 + $0x20] sm:$0xff]   ;;  %v1625_v7 = vld [vmem:[%s2397_s1 + $0x18] sm:$0xff]   ;;  %v1626_v8 = vld [vmem:[%s2397_s1 + $0x10] sm:$0xff]   ;;  %v542_v11 = vsel %vm540_vm1, 4294967295, %v1728_v10 }
   0x3   :  { %549 = vmatprep.subr.bf16.mxu0 %v1727_v0  ;;  %1600 = vmatprep.subr.bf16.mxu1 %v1727_v0  ;;  %v1633_v5 = vld [vmem:[%s2398_s0 + $0x4] ss:$8 sps:$4 sm:$0xff]   ;;  %v1629_v13 = vld [vmem:[%s2397_s1 + $0x48] ss:$0 sps:$4 sm:$0x33]   ;;  %v543_v14 = vsel %vm541_vm2, %v542_v11, 0 }
   0x4   :  { %1437 = vmatprep.mubr.msk.bf16.mxu0 %vm443_vm0, %v1633_v5  ;;  %v1636_v6 = vld [vmem:[%s2398_s0 + $0x104] ss:$8 sps:$4 sm:$0xff]   ;;  %v545_v15 = vand.u32 %v1629_v13, %v543_v14  ;;  %v1631_v17 = vld [vmem:[%s2398_s0] ss:$8 sps:$4 sm:$0xff]   ;;  %v1637_v19 = vld [vmem:[%s2398_s0 + $0x14] ss:$8 sps:$4 sm:$0xff]  }
   0x5   :  { %1453 = vmatprep.mubr.msk.bf16.mxu1 %vm443_vm0, %v1636_v6  ;;  %v1627_v9 = vld [vmem:[%s2397_s1 + $0x8] sm:$0xff]   ;;  %v1628_v12 = vld [vmem:[%s2397_s1] sm:$0xff]   ;;  %v1639_v20 = vld [vmem:[%s2398_s0 + $0x114] ss:$8 sps:$4 sm:$0xff]  }
   0x6   :  { %550 = vmatpush1.bf16.msra.mxu0 %v1622_v2  ;;  %1610 = vmatpush1.bf16.msra.mxu1 %v1622_v2  ;;  %v1630_v16 = vld [vmem:[%s2397_s1 + $0x40] sm:$0xff]   ;;  %v1641_v21 = vld [vmem:[%s2398_s0 + $0x10] ss:$8 sps:$4 sm:$0xff]   ;;  %v1649_v27 = vld [vmem:[%s2398_s0 + $0x34] ss:$8 sps:$4 sm:$0xff]  }
   0x7   :  { %551 = vmatprep.subr.bf16.mxu0 %v1727_v0  ;;  %1601 = vmatprep.subr.bf16.mxu1 %v1727_v0  ;;  %v1634_v18 = vld [vmem:[%s2398_s0 + $0x100] ss:$8 sps:$4 sm:$0xff]   ;;  %v1642_v22 = vld [vmem:[%s2398_s0 + $0x110] ss:$8 sps:$4 sm:$0xff]   ;;  %v1643_v23 = vld [vmem:[%s2398_s0 + $0x24] ss:$8 sps:$4 sm:$0xff]  }
   0x8   :  { %v1645_v24 = vld [vmem:[%s2398_s0 + $0x124] ss:$8 sps:$4 sm:$0xff]   ;;  %v1647_v25 = vld [vmem:[%s2398_s0 + $0x20] ss:$8 sps:$4 sm:$0xff]   ;;  %v1651_v28 = vld [vmem:[%s2398_s0 + $0x134] ss:$8 sps:$4 sm:$0xff]  }
   0x9   :  { %v1648_v26 = vld [vmem:[%s2398_s0 + $0x120] ss:$8 sps:$4 sm:$0xff]   ;;  %v1653_v29 = vld [vmem:[%s2398_s0 + $0x30] ss:$8 sps:$4 sm:$0xff]   ;;  %v1655_v31 = vld [vmem:[%s2398_s0 + $0x44] ss:$8 sps:$4 sm:$0xff]  }
   0xa   :  { %552 = vmatpush1.bf16.msra.mxu0 %v1623_v3  ;;  %1611 = vmatpush1.bf16.msra.mxu1 %v1623_v3  ;;  %v1654_v30 = vld [vmem:[%s2398_s0 + $0x130] ss:$8 sps:$4 sm:$0xff]   ;;  %v1657_v32 = vld [vmem:[%s2398_s0 + $0x144] ss:$8 sps:$4 sm:$0xff]   ;;  %v1659_v33 = vld [vmem:[%s2398_s0 + $0x40] ss:$8 sps:$4 sm:$0xff]  }
   0xb   :  { %553 = vmatprep.subr.bf16.mxu0 %v1727_v0  ;;  %1602 = vmatprep.subr.bf16.mxu1 %v1727_v0  ;;  %v1660_v34 = vld [vmem:[%s2398_s0 + $0x140] ss:$8 sps:$4 sm:$0xff]   ;;  %v1661_v35 = vld [vmem:[%s2398_s0 + $0x54] ss:$8 sps:$4 sm:$0xff]   ;;  %v1665_v37 = vld [vmem:[%s2398_s0 + $0x50] ss:$8 sps:$4 sm:$0xff]  }
   0xc   :  { %v1663_v36 = vld [vmem:[%s2398_s0 + $0x154] ss:$8 sps:$4 sm:$0xff]   ;;  %v1666_v38 = vld [vmem:[%s2398_s0 + $0x150] ss:$8 sps:$4 sm:$0xff]   ;;  %v1667_v39 = vld [vmem:[%s2398_s0 + $0x64] ss:$8 sps:$4 sm:$0xff]  }
   0xd   :  { %v1669_v40 = vld [vmem:[%s2398_s0 + $0x164] ss:$8 sps:$4 sm:$0xff]   ;;  %v1671_v41 = vld [vmem:[%s2398_s0 + $0x60] ss:$8 sps:$4 sm:$0xff]   ;;  %v1673_v43 = vld [vmem:[%s2398_s0 + $0x74] ss:$8 sps:$4 sm:$0xff]  }
   0xe   :  { %554 = vmatpush1.bf16.msra.mxu0 %v1624_v4  ;;  %1612 = vmatpush1.bf16.msra.mxu1 %v1624_v4  ;;  %v1672_v42 = vld [vmem:[%s2398_s0 + $0x160] ss:$8 sps:$4 sm:$0xff]   ;;  %v1675_v44 = vld [vmem:[%s2398_s0 + $0x174] ss:$8 sps:$4 sm:$0xff]   ;;  %v1677_v45 = vld [vmem:[%s2398_s0 + $0x70] ss:$8 sps:$4 sm:$0xff]  }
   0xf   :  { %555 = vmatprep.subr.bf16.mxu0 %v1727_v0  ;;  %1603 = vmatprep.subr.bf16.mxu1 %v1727_v0  ;;  %v1678_v46 = vld [vmem:[%s2398_s0 + $0x170] ss:$8 sps:$4 sm:$0xff]   ;;  %v1679_v47 = vld [vmem:[%s2398_s0 + $0x84] ss:$8 sps:$4 sm:$0xff]   ;;  %v1683_v49 = vld [vmem:[%s2398_s0 + $0x80] ss:$8 sps:$4 sm:$0xff]  }
  0x10   :  { %v1681_v48 = vld [vmem:[%s2398_s0 + $0x184] ss:$8 sps:$4 sm:$0xff]   ;;  %v1684_v50 = vld [vmem:[%s2398_s0 + $0x180] ss:$8 sps:$4 sm:$0xff]   ;;  %v1685_v51 = vld [vmem:[%s2398_s0 + $0x94] ss:$8 sps:$4 sm:$0xff]  }
  0x11   :  { %v1687_v52 = vld [vmem:[%s2398_s0 + $0x194] ss:$8 sps:$4 sm:$0xff]   ;;  %v1689_v53 = vld [vmem:[%s2398_s0 + $0x90] ss:$8 sps:$4 sm:$0xff]   ;;  %v1691_v55 = vld [vmem:[%s2398_s0 + $0xa4] ss:$8 sps:$4 sm:$0xff]  }
  0x12   :  { %556 = vmatpush1.bf16.msra.mxu0 %v1625_v7  ;;  %1613 = vmatpush1.bf16.msra.mxu1 %v1625_v7  ;;  %v1690_v54 = vld [vmem:[%s2398_s0 + $0x190] ss:$8 sps:$4 sm:$0xff]   ;;  %v1693_v56 = vld [vmem:[%s2398_s0 + $0x1a4] ss:$8 sps:$4 sm:$0xff]   ;;  %v1695_v57 = vld [vmem:[%s2398_s0 + $0xa0] ss:$8 sps:$4 sm:$0xff]  }
  0x13   :  { %557 = vmatprep.subr.bf16.mxu0 %v1727_v0  ;;  %1604 = vmatprep.subr.bf16.mxu1 %v1727_v0  ;;  %v1696_v58 = vld [vmem:[%s2398_s0 + $0x1a0] ss:$8 sps:$4 sm:$0xff]   ;;  %v1697_v59 = vld [vmem:[%s2398_s0 + $0xb4] ss:$8 sps:$4 sm:$0xff]   ;;  %v1701_v61 = vld [vmem:[%s2398_s0 + $0xb0] ss:$8 sps:$4 sm:$0xff]  }
  0x14   :  { %v1699_v60 = vld [vmem:[%s2398_s0 + $0x1b4] ss:$8 sps:$4 sm:$0xff]   ;;  %v1702_v62 = vld [vmem:[%s2398_s0 + $0x1b0] ss:$8 sps:$4 sm:$0xff]   ;;  %v1703_v63 = vld [vmem:[%s2398_s0 + $0xc4] ss:$8 sps:$4 sm:$0xff]  }
  0x15   :  { %v1707_v1 = vld [vmem:[%s2398_s0 + $0xc0] ss:$8 sps:$4 sm:$0xff]   ;;  %v1709_v3 = vld [vmem:[%s2398_s0 + $0xd4] ss:$8 sps:$4 sm:$0xff]   ;;  %v1713_v5 = vld [vmem:[%s2398_s0 + $0xd0] ss:$8 sps:$4 sm:$0xff]  }
  0x16   :  { %558 = vmatpush1.bf16.msra.mxu0 %v1626_v8  ;;  %1614 = vmatpush1.bf16.msra.mxu1 %v1626_v8  ;;  %v1708_v2 = vld [vmem:[%s2398_s0 + $0x1c0] ss:$8 sps:$4 sm:$0xff]   ;;  %v1711_v4 = vld [vmem:[%s2398_s0 + $0x1d4] ss:$8 sps:$4 sm:$0xff]   ;;  %v1714_v6 = vld [vmem:[%s2398_s0 + $0x1d0] ss:$8 sps:$4 sm:$0xff]  }
  0x17   :  { %559 = vmatprep.subr.bf16.mxu0 %v1727_v0  ;;  %1605 = vmatprep.subr.bf16.mxu1 %v1727_v0  ;;  %v1715_v7 = vld [vmem:[%s2398_s0 + $0xe4] ss:$8 sps:$4 sm:$0xff]   ;;  %v1720_v10 = vld [vmem:[%s2398_s0 + $0x1e0] ss:$8 sps:$4 sm:$0xff]   ;;  %v1721_v11 = vld [vmem:[%s2398_s0 + $0xf4] ss:$8 sps:$4 sm:$0xff]  }
  0x18   :  { %v1717_v8 = vld [vmem:[%s2398_s0 + $0x1e4] ss:$8 sps:$4 sm:$0xff]   ;;  %v1725_v13 = vld [vmem:[%s2398_s0 + $0xf0] ss:$8 sps:$4 sm:$0xff]  }
  0x19   :  { %v1726_v14 = vld [vmem:[%s2398_s0 + $0x1f0] ss:$8 sps:$4 sm:$0xff]  }
  0x1a   :  { %560 = vmatpush1.bf16.msra.mxu0 %v1627_v9  ;;  %1615 = vmatpush1.bf16.msra.mxu1 %v1627_v9  ;;  %v1719_v9 = vld [vmem:[%s2398_s0 + $0xe0] ss:$8 sps:$4 sm:$0xff]  }
  0x1b   :  { %561 = vmatprep.subr.bf16.mxu0 %v1727_v0  ;;  %1606 = vmatprep.subr.bf16.mxu1 %v1727_v0 }
  0x1e   :  { %562 = vmatpush1.bf16.msra.mxu0 %v1628_v12  ;;  %1616 = vmatpush1.bf16.msra.mxu1 %v1628_v12  ;;  %v1723_v12 = vld [vmem:[%s2398_s0 + $0x1f4] ss:$8 sps:$4 sm:$0xff]  }
  0x1f   :  { %575 = vmatprep.subr.bf16.mxu0 %v1727_v0  ;;  %1607 = vmatprep.subr.bf16.mxu1 %v1727_v0 }
  0x22   :  { %576 = vmatpush2.bf16.msra.mxu0 %v545_v15  ;;  %1617 = vmatpush2.bf16.msra.mxu1 %v545_v15  ;;  %v2006_v15 = vld [vmem:[%s2399_s2] ss:$0 sm:$0xff] }
  0x23   :  { %577 = vmatprep.subr.bf16.mxu0 %v1727_v0  ;;  %1608 = vmatprep.subr.bf16.mxu1 %v1727_v0  ;;  %v1705_v0 = vld [vmem:[%s2398_s0 + $0x1c4] ss:$8 sps:$4 sm:$0xff]  }
  0x26   :  { %578 = vmatpush2.bf16.msra.mxu0 %v1630_v16  ;;  %1618 = vmatpush2.bf16.msra.mxu1 %v1630_v16 }
  0x29   :  { %580 = vmatmul.mubr.bf16.vlgmr.msra.gmra.mxu0 %v1631_v17  ;;  %708 = vmatmul.mubr.bf16.vlgmr.msra.gmra.mxu1 %v1634_v18  ;;  %v2011_v17 = vld [vmem:[%s2399_s2 + $0x1] ss:$0 sm:$0xff] }
  0x2a   :  { %1438 = vmatprep.mubr.msk.bf16.mxu0 %vm443_vm0, %v1637_v19  ;;  %1454 = vmatprep.mubr.msk.bf16.mxu1 %vm443_vm0, %v1639_v20 }
  0x31   :  { %588 = vmatmul.mubr.bf16.gmra.mxu0 %v1641_v21  ;;  %716 = vmatmul.mubr.bf16.gmra.mxu1 %v1642_v22 }
  0x32   :  { %1439 = vmatprep.mubr.msk.bf16.mxu0 %vm443_vm0, %v1643_v23  ;;  %1455 = vmatprep.mubr.msk.bf16.mxu1 %vm443_vm0, %v1645_v24 }
  0x39   :  { %596 = vmatmul.mubr.bf16.gmra.mxu0 %v1647_v25  ;;  %724 = vmatmul.mubr.bf16.gmra.mxu1 %v1648_v26 }
  0x3a   :  { %1440 = vmatprep.mubr.msk.bf16.mxu0 %vm443_vm0, %v1649_v27  ;;  %1456 = vmatprep.mubr.msk.bf16.mxu1 %vm443_vm0, %v1651_v28 }
  0x41   :  { %604 = vmatmul.mubr.bf16.gmra.mxu0 %v1653_v29  ;;  %732 = vmatmul.mubr.bf16.gmra.mxu1 %v1654_v30 }
  0x42   :  { %1441 = vmatprep.mubr.msk.bf16.mxu0 %vm443_vm0, %v1655_v31  ;;  %1457 = vmatprep.mubr.msk.bf16.mxu1 %vm443_vm0, %v1657_v32 }
  0x49   :  { %612 = vmatmul.mubr.bf16.gmra.mxu0 %v1659_v33  ;;  %740 = vmatmul.mubr.bf16.gmra.mxu1 %v1660_v34 }
  0x4a   :  { %1442 = vmatprep.mubr.msk.bf16.mxu0 %vm443_vm0, %v1661_v35  ;;  %1458 = vmatprep.mubr.msk.bf16.mxu1 %vm443_vm0, %v1663_v36 }
  0x51   :  { %620 = vmatmul.mubr.bf16.gmra.mxu0 %v1665_v37  ;;  %748 = vmatmul.mubr.bf16.gmra.mxu1 %v1666_v38 }
  0x52   :  { %1443 = vmatprep.mubr.msk.bf16.mxu0 %vm443_vm0, %v1667_v39  ;;  %1459 = vmatprep.mubr.msk.bf16.mxu1 %vm443_vm0, %v1669_v40 }
  0x59   :  { %628 = vmatmul.mubr.bf16.gmra.mxu0 %v1671_v41  ;;  %756 = vmatmul.mubr.bf16.gmra.mxu1 %v1672_v42 }
  0x5a   :  { %1444 = vmatprep.mubr.msk.bf16.mxu0 %vm443_vm0, %v1673_v43  ;;  %1460 = vmatprep.mubr.msk.bf16.mxu1 %vm443_vm0, %v1675_v44 }
  0x61   :  { %636 = vmatmul.mubr.bf16.gmra.mxu0 %v1677_v45  ;;  %764 = vmatmul.mubr.bf16.gmra.mxu1 %v1678_v46 }
  0x62   :  { %1445 = vmatprep.mubr.msk.bf16.mxu0 %vm443_vm0, %v1679_v47  ;;  %1461 = vmatprep.mubr.msk.bf16.mxu1 %vm443_vm0, %v1681_v48 }
  0x69   :  { %644 = vmatmul.mubr.bf16.gmra.mxu0 %v1683_v49  ;;  %772 = vmatmul.mubr.bf16.gmra.mxu1 %v1684_v50 }
  0x6a   :  { %1446 = vmatprep.mubr.msk.bf16.mxu0 %vm443_vm0, %v1685_v51  ;;  %1462 = vmatprep.mubr.msk.bf16.mxu1 %vm443_vm0, %v1687_v52 }
  0x71   :  { %652 = vmatmul.mubr.bf16.gmra.mxu0 %v1689_v53  ;;  %780 = vmatmul.mubr.bf16.gmra.mxu1 %v1690_v54 }
  0x72   :  { %1447 = vmatprep.mubr.msk.bf16.mxu0 %vm443_vm0, %v1691_v55  ;;  %1463 = vmatprep.mubr.msk.bf16.mxu1 %vm443_vm0, %v1693_v56 }
  0x79   :  { %660 = vmatmul.mubr.bf16.gmra.mxu0 %v1695_v57  ;;  %788 = vmatmul.mubr.bf16.gmra.mxu1 %v1696_v58 }
  0x7a   :  { %1448 = vmatprep.mubr.msk.bf16.mxu0 %vm443_vm0, %v1697_v59  ;;  %1464 = vmatprep.mubr.msk.bf16.mxu1 %vm443_vm0, %v1699_v60 }
  0x81   :  { %668 = vmatmul.mubr.bf16.gmra.mxu0 %v1701_v61  ;;  %796 = vmatmul.mubr.bf16.gmra.mxu1 %v1702_v62 }
  0x82   :  { %1449 = vmatprep.mubr.msk.bf16.mxu0 %vm443_vm0, %v1703_v63  ;;  %1465 = vmatprep.mubr.msk.bf16.mxu1 %vm443_vm0, %v1705_v0 }
  0x89   :  { %676 = vmatmul.mubr.bf16.gmra.mxu0 %v1707_v1  ;;  %804 = vmatmul.mubr.bf16.gmra.mxu1 %v1708_v2 }
  0x8a   :  { %1450 = vmatprep.mubr.msk.bf16.mxu0 %vm443_vm0, %v1709_v3  ;;  %1466 = vmatprep.mubr.msk.bf16.mxu1 %vm443_vm0, %v1711_v4 }
  0x91   :  { %684 = vmatmul.mubr.bf16.gmra.mxu0 %v1713_v5  ;;  %812 = vmatmul.mubr.bf16.gmra.mxu1 %v1714_v6 }
  0x92   :  { %1451 = vmatprep.mubr.msk.bf16.mxu0 %vm443_vm0, %v1715_v7  ;;  %1467 = vmatprep.mubr.msk.bf16.mxu1 %vm443_vm0, %v1717_v8 }
  0x99   :  { %692 = vmatmul.mubr.bf16.gmra.mxu0 %v1719_v9  ;;  %820 = vmatmul.mubr.bf16.gmra.mxu1 %v1720_v10 }
  0x9a   :  { %1452 = vmatprep.mubr.msk.bf16.mxu0 %vm443_vm0, %v1721_v11  ;;  %1468 = vmatprep.mubr.msk.bf16.mxu1 %vm443_vm0, %v1723_v12 }
  0xa1   :  { %700 = vmatmul.mubr.bf16.gmra.mxu0 %v1725_v13  ;;  %828 = vmatmul.mubr.bf16.gmra.mxu1 %v1726_v14 }
  0xe9   :  { %v581_v16 = vpop.f32.mrf.mxu0  ;;  %v709_v18 = vpop.f32.mrf.mxu1 }
  0xea   :  { %v841_v19 = vmul.f32 %v2006_v15, %v581_v16  ;;  %v873_v20 = vmul.f32 %v2006_v15, %v709_v18 }
  0xeb   :  { %v583_v21 = vpop.f32.mrf.mxu0  ;;  %v711_v22 = vpop.f32.mrf.mxu1 }
  0xec   :  { %v910_v23 = vadd.f32 %v2011_v17, %v841_v19  ;;  %v942_v24 = vadd.f32 %v2011_v17, %v873_v20 }
  0xed   :  { %v584_v25 = vpop.f32.mrf.mxu0  ;;  %v712_v26 = vpop.f32.mrf.mxu1 }
  0xee   :  { %v974_v27 = vmax.f32 %v910_v23, 0.0  ;;  %v1006_v28 = vmax.f32 %v942_v24, 0.0  ;;  %v842_v29 = vmul.f32 %v2006_v15, %v584_v25  ;;  %v874_v30 = vmul.f32 %v2006_v15, %v712_v26 }
  0xef   :  { %v586_v31 = vpop.f32.mrf.mxu0  ;;  %v714_v32 = vpop.f32.mrf.mxu1 }
  0xf0   :  { %v1535_v33 = vpack.c.bf16 %v974_v27, %v974_v27  ;;  %v1567_v34 = vpack.c.bf16 %v1006_v28, %v1006_v28  ;;  %v911_v35 = vadd.f32 %v2011_v17, %v842_v29  ;;  %v943_v36 = vadd.f32 %v2011_v17, %v874_v30 }
  0xf1   :  { %v589_v37 = vpop.f32.mrf.mxu0  ;;  %v717_v38 = vpop.f32.mrf.mxu1 }
  0xf2   :  { %1295 = vst.msk [vmem:[%s2400_s3] sm:$0xf] %vm1294_vm3, %v1535_v33  ;;  %1327 = vst.msk [vmem:[%s2400_s3 + $0x80] sm:$0xf] %vm1294_vm3, %v1567_v34  ;;  %v975_v39 = vmax.f32 %v911_v35, 0.0  ;;  %v1007_v40 = vmax.f32 %v943_v36, 0.0  ;;  %v843_v41 = vmul.f32 %v2006_v15, %v589_v37  ;;  %v875_v42 = vmul.f32 %v2006_v15, %v717_v38 }
  0xf3   :  { %v591_v43 = vpop.f32.mrf.mxu0  ;;  %v719_v44 = vpop.f32.mrf.mxu1 }
  0xf4   :  { %v1536_v45 = vpack.c.bf16 %v975_v39, %v975_v39  ;;  %v1568_v46 = vpack.c.bf16 %v1007_v40, %v1007_v40  ;;  %v912_v47 = vadd.f32 %v2011_v17, %v843_v41  ;;  %v944_v48 = vadd.f32 %v2011_v17, %v875_v42 }
  0xf5   :  { %v592_v49 = vpop.f32.mrf.mxu0  ;;  %v720_v50 = vpop.f32.mrf.mxu1 }
  0xf6   :  { %1296 = vst.msk [vmem:[%s2400_s3 + $0x4] sm:$0xf] %vm1294_vm3, %v1536_v45  ;;  %1328 = vst.msk [vmem:[%s2400_s3 + $0x84] sm:$0xf] %vm1294_vm3, %v1568_v46  ;;  %v976_v51 = vmax.f32 %v912_v47, 0.0  ;;  %v1008_v52 = vmax.f32 %v944_v48, 0.0  ;;  %v844_v53 = vmul.f32 %v2006_v15, %v592_v49  ;;  %v876_v54 = vmul.f32 %v2006_v15, %v720_v50 }
  0xf7   :  { %v594_v55 = vpop.f32.mrf.mxu0  ;;  %v722_v56 = vpop.f32.mrf.mxu1 }
  0xf8   :  { %v1537_v57 = vpack.c.bf16 %v976_v51, %v976_v51  ;;  %v1569_v58 = vpack.c.bf16 %v1008_v52, %v1008_v52  ;;  %v913_v59 = vadd.f32 %v2011_v17, %v844_v53  ;;  %v945_v60 = vadd.f32 %v2011_v17, %v876_v54 }
  0xf9   :  { %v597_v61 = vpop.f32.mrf.mxu0  ;;  %v725_v62 = vpop.f32.mrf.mxu1 }
  0xfa   :  { %1297 = vst.msk [vmem:[%s2400_s3 + $0x8] sm:$0xf] %vm1294_vm3, %v1537_v57  ;;  %1329 = vst.msk [vmem:[%s2400_s3 + $0x88] sm:$0xf] %vm1294_vm3, %v1569_v58  ;;  %v977_v63 = vmax.f32 %v913_v59, 0.0  ;;  %v1009_v0 = vmax.f32 %v945_v60, 0.0  ;;  %v845_v1 = vmul.f32 %v2006_v15, %v597_v61  ;;  %v877_v2 = vmul.f32 %v2006_v15, %v725_v62 }
  0xfb   :  { %v599_v3 = vpop.f32.mrf.mxu0  ;;  %v727_v4 = vpop.f32.mrf.mxu1 }
  0xfc   :  { %v1538_v5 = vpack.c.bf16 %v977_v63, %v977_v63  ;;  %v1570_v6 = vpack.c.bf16 %v1009_v0, %v1009_v0  ;;  %v914_v7 = vadd.f32 %v2011_v17, %v845_v1  ;;  %v946_v8 = vadd.f32 %v2011_v17, %v877_v2 }
  0xfd   :  { %v600_v9 = vpop.f32.mrf.mxu0  ;;  %v728_v10 = vpop.f32.mrf.mxu1 }
  0xfe   :  { %1298 = vst.msk [vmem:[%s2400_s3 + $0xc] sm:$0xf] %vm1294_vm3, %v1538_v5  ;;  %1330 = vst.msk [vmem:[%s2400_s3 + $0x8c] sm:$0xf] %vm1294_vm3, %v1570_v6  ;;  %v978_v11 = vmax.f32 %v914_v7, 0.0  ;;  %v1010_v12 = vmax.f32 %v946_v8, 0.0  ;;  %v846_v13 = vmul.f32 %v2006_v15, %v600_v9  ;;  %v878_v14 = vmul.f32 %v2006_v15, %v728_v10 }
  0xff   :  { %v602_v16 = vpop.f32.mrf.mxu0  ;;  %v730_v18 = vpop.f32.mrf.mxu1 }
 0x100   :  { %v1539_v19 = vpack.c.bf16 %v978_v11, %v978_v11  ;;  %v1571_v20 = vpack.c.bf16 %v1010_v12, %v1010_v12  ;;  %v915_v21 = vadd.f32 %v2011_v17, %v846_v13  ;;  %v947_v22 = vadd.f32 %v2011_v17, %v878_v14 }
 0x101   :  { %v605_v23 = vpop.f32.mrf.mxu0  ;;  %v733_v24 = vpop.f32.mrf.mxu1 }
 0x102   :  { %1299 = vst.msk [vmem:[%s2400_s3 + $0x10] sm:$0xf] %vm1294_vm3, %v1539_v19  ;;  %1331 = vst.msk [vmem:[%s2400_s3 + $0x90] sm:$0xf] %vm1294_vm3, %v1571_v20  ;;  %v979_v25 = vmax.f32 %v915_v21, 0.0  ;;  %v1011_v26 = vmax.f32 %v947_v22, 0.0  ;;  %v847_v27 = vmul.f32 %v2006_v15, %v605_v23  ;;  %v879_v28 = vmul.f32 %v2006_v15, %v733_v24 }
 0x103   :  { %v607_v29 = vpop.f32.mrf.mxu0  ;;  %v735_v30 = vpop.f32.mrf.mxu1 }
 0x104   :  { %v1540_v31 = vpack.c.bf16 %v979_v25, %v979_v25  ;;  %v1572_v32 = vpack.c.bf16 %v1011_v26, %v1011_v26  ;;  %v916_v33 = vadd.f32 %v2011_v17, %v847_v27  ;;  %v948_v34 = vadd.f32 %v2011_v17, %v879_v28 }
 0x105   :  { %v608_v35 = vpop.f32.mrf.mxu0  ;;  %v736_v36 = vpop.f32.mrf.mxu1 }
 0x106   :  { %1300 = vst.msk [vmem:[%s2400_s3 + $0x14] sm:$0xf] %vm1294_vm3, %v1540_v31  ;;  %1332 = vst.msk [vmem:[%s2400_s3 + $0x94] sm:$0xf] %vm1294_vm3, %v1572_v32  ;;  %v980_v37 = vmax.f32 %v916_v33, 0.0  ;;  %v1012_v38 = vmax.f32 %v948_v34, 0.0  ;;  %v848_v39 = vmul.f32 %v2006_v15, %v608_v35  ;;  %v880_v40 = vmul.f32 %v2006_v15, %v736_v36 }
 0x107   :  { %v610_v41 = vpop.f32.mrf.mxu0  ;;  %v738_v42 = vpop.f32.mrf.mxu1 }
 0x108   :  { %v1541_v43 = vpack.c.bf16 %v980_v37, %v980_v37  ;;  %v1573_v44 = vpack.c.bf16 %v1012_v38, %v1012_v38  ;;  %v917_v45 = vadd.f32 %v2011_v17, %v848_v39  ;;  %v949_v46 = vadd.f32 %v2011_v17, %v880_v40 }
 0x109   :  { %v613_v47 = vpop.f32.mrf.mxu0  ;;  %v741_v48 = vpop.f32.mrf.mxu1 }
 0x10a   :  { %1301 = vst.msk [vmem:[%s2400_s3 + $0x18] sm:$0xf] %vm1294_vm3, %v1541_v43  ;;  %1333 = vst.msk [vmem:[%s2400_s3 + $0x98] sm:$0xf] %vm1294_vm3, %v1573_v44  ;;  %v981_v49 = vmax.f32 %v917_v45, 0.0  ;;  %v1013_v50 = vmax.f32 %v949_v46, 0.0  ;;  %v849_v51 = vmul.f32 %v2006_v15, %v613_v47  ;;  %v881_v52 = vmul.f32 %v2006_v15, %v741_v48 }
 0x10b   :  { %v615_v53 = vpop.f32.mrf.mxu0  ;;  %v743_v54 = vpop.f32.mrf.mxu1 }
 0x10c   :  { %v1542_v55 = vpack.c.bf16 %v981_v49, %v981_v49  ;;  %v1574_v56 = vpack.c.bf16 %v1013_v50, %v1013_v50  ;;  %v918_v57 = vadd.f32 %v2011_v17, %v849_v51  ;;  %v950_v58 = vadd.f32 %v2011_v17, %v881_v52 }
 0x10d   :  { %v616_v59 = vpop.f32.mrf.mxu0  ;;  %v744_v60 = vpop.f32.mrf.mxu1 }
 0x10e   :  { %1302 = vst.msk [vmem:[%s2400_s3 + $0x1c] sm:$0xf] %vm1294_vm3, %v1542_v55  ;;  %1334 = vst.msk [vmem:[%s2400_s3 + $0x9c] sm:$0xf] %vm1294_vm3, %v1574_v56  ;;  %v982_v61 = vmax.f32 %v918_v57, 0.0  ;;  %v1014_v62 = vmax.f32 %v950_v58, 0.0  ;;  %v850_v63 = vmul.f32 %v2006_v15, %v616_v59  ;;  %v882_v0 = vmul.f32 %v2006_v15, %v744_v60 }
 0x10f   :  { %v618_v1 = vpop.f32.mrf.mxu0  ;;  %v746_v2 = vpop.f32.mrf.mxu1 }
 0x110   :  { %v1543_v3 = vpack.c.bf16 %v982_v61, %v982_v61  ;;  %v1575_v4 = vpack.c.bf16 %v1014_v62, %v1014_v62  ;;  %v919_v5 = vadd.f32 %v2011_v17, %v850_v63  ;;  %v951_v6 = vadd.f32 %v2011_v17, %v882_v0 }
 0x111   :  { %v621_v7 = vpop.f32.mrf.mxu0  ;;  %v749_v8 = vpop.f32.mrf.mxu1 }
 0x112   :  { %1303 = vst.msk [vmem:[%s2400_s3 + $0x20] sm:$0xf] %vm1294_vm3, %v1543_v3  ;;  %1335 = vst.msk [vmem:[%s2400_s3 + $0xa0] sm:$0xf] %vm1294_vm3, %v1575_v4  ;;  %v983_v9 = vmax.f32 %v919_v5, 0.0  ;;  %v1015_v10 = vmax.f32 %v951_v6, 0.0  ;;  %v851_v11 = vmul.f32 %v2006_v15, %v621_v7  ;;  %v883_v12 = vmul.f32 %v2006_v15, %v749_v8 }
 0x113   :  { %v623_v13 = vpop.f32.mrf.mxu0  ;;  %v751_v14 = vpop.f32.mrf.mxu1 }
 0x114   :  { %v1544_v16 = vpack.c.bf16 %v983_v9, %v983_v9  ;;  %v1576_v18 = vpack.c.bf16 %v1015_v10, %v1015_v10  ;;  %v920_v19 = vadd.f32 %v2011_v17, %v851_v11  ;;  %v952_v20 = vadd.f32 %v2011_v17, %v883_v12 }
 0x115   :  { %v624_v21 = vpop.f32.mrf.mxu0  ;;  %v752_v22 = vpop.f32.mrf.mxu1 }
 0x116   :  { %1304 = vst.msk [vmem:[%s2400_s3 + $0x24] sm:$0xf] %vm1294_vm3, %v1544_v16  ;;  %1336 = vst.msk [vmem:[%s2400_s3 + $0xa4] sm:$0xf] %vm1294_vm3, %v1576_v18  ;;  %v984_v23 = vmax.f32 %v920_v19, 0.0  ;;  %v1016_v24 = vmax.f32 %v952_v20, 0.0  ;;  %v852_v25 = vmul.f32 %v2006_v15, %v624_v21  ;;  %v884_v26 = vmul.f32 %v2006_v15, %v752_v22 }
 0x117   :  { %v626_v27 = vpop.f32.mrf.mxu0  ;;  %v754_v28 = vpop.f32.mrf.mxu1 }
 0x118   :  { %v1545_v29 = vpack.c.bf16 %v984_v23, %v984_v23  ;;  %v1577_v30 = vpack.c.bf16 %v1016_v24, %v1016_v24  ;;  %v921_v31 = vadd.f32 %v2011_v17, %v852_v25  ;;  %v953_v32 = vadd.f32 %v2011_v17, %v884_v26 }
 0x119   :  { %v629_v33 = vpop.f32.mrf.mxu0  ;;  %v757_v34 = vpop.f32.mrf.mxu1 }
 0x11a   :  { %1305 = vst.msk [vmem:[%s2400_s3 + $0x28] sm:$0xf] %vm1294_vm3, %v1545_v29  ;;  %1337 = vst.msk [vmem:[%s2400_s3 + $0xa8] sm:$0xf] %vm1294_vm3, %v1577_v30  ;;  %v985_v35 = vmax.f32 %v921_v31, 0.0  ;;  %v1017_v36 = vmax.f32 %v953_v32, 0.0  ;;  %v853_v37 = vmul.f32 %v2006_v15, %v629_v33  ;;  %v885_v38 = vmul.f32 %v2006_v15, %v757_v34 }
 0x11b   :  { %v631_v39 = vpop.f32.mrf.mxu0  ;;  %v759_v40 = vpop.f32.mrf.mxu1 }
 0x11c   :  { %v1546_v41 = vpack.c.bf16 %v985_v35, %v985_v35  ;;  %v1578_v42 = vpack.c.bf16 %v1017_v36, %v1017_v36  ;;  %v922_v43 = vadd.f32 %v2011_v17, %v853_v37  ;;  %v954_v44 = vadd.f32 %v2011_v17, %v885_v38 }
 0x11d   :  { %v632_v45 = vpop.f32.mrf.mxu0  ;;  %v760_v46 = vpop.f32.mrf.mxu1 }
 0x11e   :  { %1306 = vst.msk [vmem:[%s2400_s3 + $0x2c] sm:$0xf] %vm1294_vm3, %v1546_v41  ;;  %1338 = vst.msk [vmem:[%s2400_s3 + $0xac] sm:$0xf] %vm1294_vm3, %v1578_v42  ;;  %v986_v47 = vmax.f32 %v922_v43, 0.0  ;;  %v1018_v48 = vmax.f32 %v954_v44, 0.0  ;;  %v854_v49 = vmul.f32 %v2006_v15, %v632_v45  ;;  %v886_v50 = vmul.f32 %v2006_v15, %v760_v46 }
 0x11f   :  { %v634_v51 = vpop.f32.mrf.mxu0  ;;  %v762_v52 = vpop.f32.mrf.mxu1 }
 0x120   :  { %v1547_v53 = vpack.c.bf16 %v986_v47, %v986_v47  ;;  %v1579_v54 = vpack.c.bf16 %v1018_v48, %v1018_v48  ;;  %v923_v55 = vadd.f32 %v2011_v17, %v854_v49  ;;  %v955_v56 = vadd.f32 %v2011_v17, %v886_v50 }
 0x121   :  { %v637_v57 = vpop.f32.mrf.mxu0  ;;  %v765_v58 = vpop.f32.mrf.mxu1 }
 0x122   :  { %1307 = vst.msk [vmem:[%s2400_s3 + $0x30] sm:$0xf] %vm1294_vm3, %v1547_v53  ;;  %1339 = vst.msk [vmem:[%s2400_s3 + $0xb0] sm:$0xf] %vm1294_vm3, %v1579_v54  ;;  %v987_v59 = vmax.f32 %v923_v55, 0.0  ;;  %v1019_v60 = vmax.f32 %v955_v56, 0.0  ;;  %v855_v61 = vmul.f32 %v2006_v15, %v637_v57  ;;  %v887_v62 = vmul.f32 %v2006_v15, %v765_v58 }
 0x123   :  { %v639_v63 = vpop.f32.mrf.mxu0  ;;  %v767_v0 = vpop.f32.mrf.mxu1 }
 0x124   :  { %v1548_v1 = vpack.c.bf16 %v987_v59, %v987_v59  ;;  %v1580_v2 = vpack.c.bf16 %v1019_v60, %v1019_v60  ;;  %v924_v3 = vadd.f32 %v2011_v17, %v855_v61  ;;  %v956_v4 = vadd.f32 %v2011_v17, %v887_v62 }
 0x125   :  { %v640_v5 = vpop.f32.mrf.mxu0  ;;  %v768_v6 = vpop.f32.mrf.mxu1 }
 0x126   :  { %1308 = vst.msk [vmem:[%s2400_s3 + $0x34] sm:$0xf] %vm1294_vm3, %v1548_v1  ;;  %1340 = vst.msk [vmem:[%s2400_s3 + $0xb4] sm:$0xf] %vm1294_vm3, %v1580_v2  ;;  %v988_v7 = vmax.f32 %v924_v3, 0.0  ;;  %v1020_v8 = vmax.f32 %v956_v4, 0.0  ;;  %v856_v9 = vmul.f32 %v2006_v15, %v640_v5  ;;  %v888_v10 = vmul.f32 %v2006_v15, %v768_v6 }
 0x127   :  { %v642_v11 = vpop.f32.mrf.mxu0  ;;  %v770_v12 = vpop.f32.mrf.mxu1 }
 0x128   :  { %v1549_v13 = vpack.c.bf16 %v988_v7, %v988_v7  ;;  %v1581_v14 = vpack.c.bf16 %v1020_v8, %v1020_v8  ;;  %v925_v16 = vadd.f32 %v2011_v17, %v856_v9  ;;  %v957_v18 = vadd.f32 %v2011_v17, %v888_v10 }
 0x129   :  { %v645_v19 = vpop.f32.mrf.mxu0  ;;  %v773_v20 = vpop.f32.mrf.mxu1 }
 0x12a   :  { %1309 = vst.msk [vmem:[%s2400_s3 + $0x38] sm:$0xf] %vm1294_vm3, %v1549_v13  ;;  %1341 = vst.msk [vmem:[%s2400_s3 + $0xb8] sm:$0xf] %vm1294_vm3, %v1581_v14  ;;  %v989_v21 = vmax.f32 %v925_v16, 0.0  ;;  %v1021_v22 = vmax.f32 %v957_v18, 0.0  ;;  %v857_v23 = vmul.f32 %v2006_v15, %v645_v19  ;;  %v889_v24 = vmul.f32 %v2006_v15, %v773_v20 }
 0x12b   :  { %v647_v25 = vpop.f32.mrf.mxu0  ;;  %v775_v26 = vpop.f32.mrf.mxu1 }
 0x12c   :  { %v1550_v27 = vpack.c.bf16 %v989_v21, %v989_v21  ;;  %v1582_v28 = vpack.c.bf16 %v1021_v22, %v1021_v22  ;;  %v926_v29 = vadd.f32 %v2011_v17, %v857_v23  ;;  %v958_v30 = vadd.f32 %v2011_v17, %v889_v24 }
 0x12d   :  { %v648_v31 = vpop.f32.mrf.mxu0  ;;  %v776_v32 = vpop.f32.mrf.mxu1 }
 0x12e   :  { %1310 = vst.msk [vmem:[%s2400_s3 + $0x3c] sm:$0xf] %vm1294_vm3, %v1550_v27  ;;  %1342 = vst.msk [vmem:[%s2400_s3 + $0xbc] sm:$0xf] %vm1294_vm3, %v1582_v28  ;;  %v990_v33 = vmax.f32 %v926_v29, 0.0  ;;  %v1022_v34 = vmax.f32 %v958_v30, 0.0  ;;  %v858_v35 = vmul.f32 %v2006_v15, %v648_v31  ;;  %v890_v36 = vmul.f32 %v2006_v15, %v776_v32 }
 0x12f   :  { %v650_v37 = vpop.f32.mrf.mxu0  ;;  %v778_v38 = vpop.f32.mrf.mxu1 }
 0x130   :  { %v1551_v39 = vpack.c.bf16 %v990_v33, %v990_v33  ;;  %v1583_v40 = vpack.c.bf16 %v1022_v34, %v1022_v34  ;;  %v927_v41 = vadd.f32 %v2011_v17, %v858_v35  ;;  %v959_v42 = vadd.f32 %v2011_v17, %v890_v36 }
 0x131   :  { %v653_v43 = vpop.f32.mrf.mxu0  ;;  %v781_v44 = vpop.f32.mrf.mxu1 }
 0x132   :  { %1311 = vst.msk [vmem:[%s2400_s3 + $0x40] sm:$0xf] %vm1294_vm3, %v1551_v39  ;;  %1343 = vst.msk [vmem:[%s2400_s3 + $0xc0] sm:$0xf] %vm1294_vm3, %v1583_v40  ;;  %v991_v45 = vmax.f32 %v927_v41, 0.0  ;;  %v1023_v46 = vmax.f32 %v959_v42, 0.0  ;;  %v859_v47 = vmul.f32 %v2006_v15, %v653_v43  ;;  %v891_v48 = vmul.f32 %v2006_v15, %v781_v44 }
 0x133   :  { %v655_v49 = vpop.f32.mrf.mxu0  ;;  %v783_v50 = vpop.f32.mrf.mxu1 }
 0x134   :  { %v1552_v51 = vpack.c.bf16 %v991_v45, %v991_v45  ;;  %v1584_v52 = vpack.c.bf16 %v1023_v46, %v1023_v46  ;;  %v928_v53 = vadd.f32 %v2011_v17, %v859_v47  ;;  %v960_v54 = vadd.f32 %v2011_v17, %v891_v48 }
 0x135   :  { %v656_v55 = vpop.f32.mrf.mxu0  ;;  %v784_v56 = vpop.f32.mrf.mxu1 }
 0x136   :  { %1312 = vst.msk [vmem:[%s2400_s3 + $0x44] sm:$0xf] %vm1294_vm3, %v1552_v51  ;;  %1344 = vst.msk [vmem:[%s2400_s3 + $0xc4] sm:$0xf] %vm1294_vm3, %v1584_v52  ;;  %v992_v57 = vmax.f32 %v928_v53, 0.0  ;;  %v1024_v58 = vmax.f32 %v960_v54, 0.0  ;;  %v860_v59 = vmul.f32 %v2006_v15, %v656_v55  ;;  %v892_v60 = vmul.f32 %v2006_v15, %v784_v56 }
 0x137   :  { %v658_v61 = vpop.f32.mrf.mxu0  ;;  %v786_v62 = vpop.f32.mrf.mxu1 }
 0x138   :  { %v1553_v63 = vpack.c.bf16 %v992_v57, %v992_v57  ;;  %v1585_v0 = vpack.c.bf16 %v1024_v58, %v1024_v58  ;;  %v929_v1 = vadd.f32 %v2011_v17, %v860_v59  ;;  %v961_v2 = vadd.f32 %v2011_v17, %v892_v60 }
 0x139   :  { %v661_v3 = vpop.f32.mrf.mxu0  ;;  %v789_v4 = vpop.f32.mrf.mxu1 }
 0x13a   :  { %1313 = vst.msk [vmem:[%s2400_s3 + $0x48] sm:$0xf] %vm1294_vm3, %v1553_v63  ;;  %1345 = vst.msk [vmem:[%s2400_s3 + $0xc8] sm:$0xf] %vm1294_vm3, %v1585_v0  ;;  %v993_v5 = vmax.f32 %v929_v1, 0.0  ;;  %v1025_v6 = vmax.f32 %v961_v2, 0.0  ;;  %v861_v7 = vmul.f32 %v2006_v15, %v661_v3  ;;  %v893_v8 = vmul.f32 %v2006_v15, %v789_v4 }
 0x13b   :  { %v663_v9 = vpop.f32.mrf.mxu0  ;;  %v791_v10 = vpop.f32.mrf.mxu1 }
 0x13c   :  { %v1554_v11 = vpack.c.bf16 %v993_v5, %v993_v5  ;;  %v1586_v12 = vpack.c.bf16 %v1025_v6, %v1025_v6  ;;  %v930_v13 = vadd.f32 %v2011_v17, %v861_v7  ;;  %v962_v14 = vadd.f32 %v2011_v17, %v893_v8 }
 0x13d   :  { %v664_v16 = vpop.f32.mrf.mxu0  ;;  %v792_v18 = vpop.f32.mrf.mxu1 }
 0x13e   :  { %1314 = vst.msk [vmem:[%s2400_s3 + $0x4c] sm:$0xf] %vm1294_vm3, %v1554_v11  ;;  %1346 = vst.msk [vmem:[%s2400_s3 + $0xcc] sm:$0xf] %vm1294_vm3, %v1586_v12  ;;  %v994_v19 = vmax.f32 %v930_v13, 0.0  ;;  %v1026_v20 = vmax.f32 %v962_v14, 0.0  ;;  %v862_v21 = vmul.f32 %v2006_v15, %v664_v16  ;;  %v894_v22 = vmul.f32 %v2006_v15, %v792_v18 }
 0x13f   :  { %v666_v23 = vpop.f32.mrf.mxu0  ;;  %v794_v24 = vpop.f32.mrf.mxu1 }
 0x140   :  { %v1555_v25 = vpack.c.bf16 %v994_v19, %v994_v19  ;;  %v1587_v26 = vpack.c.bf16 %v1026_v20, %v1026_v20  ;;  %v931_v27 = vadd.f32 %v2011_v17, %v862_v21  ;;  %v963_v28 = vadd.f32 %v2011_v17, %v894_v22 }
 0x141   :  { %v669_v29 = vpop.f32.mrf.mxu0  ;;  %v797_v30 = vpop.f32.mrf.mxu1 }
 0x142   :  { %1315 = vst.msk [vmem:[%s2400_s3 + $0x50] sm:$0xf] %vm1294_vm3, %v1555_v25  ;;  %1347 = vst.msk [vmem:[%s2400_s3 + $0xd0] sm:$0xf] %vm1294_vm3, %v1587_v26  ;;  %v995_v31 = vmax.f32 %v931_v27, 0.0  ;;  %v1027_v32 = vmax.f32 %v963_v28, 0.0  ;;  %v863_v33 = vmul.f32 %v2006_v15, %v669_v29  ;;  %v895_v34 = vmul.f32 %v2006_v15, %v797_v30 }
 0x143   :  { %v671_v35 = vpop.f32.mrf.mxu0  ;;  %v799_v36 = vpop.f32.mrf.mxu1 }
 0x144   :  { %v1556_v37 = vpack.c.bf16 %v995_v31, %v995_v31  ;;  %v1588_v38 = vpack.c.bf16 %v1027_v32, %v1027_v32  ;;  %v932_v39 = vadd.f32 %v2011_v17, %v863_v33  ;;  %v964_v40 = vadd.f32 %v2011_v17, %v895_v34 }
 0x145   :  { %v672_v41 = vpop.f32.mrf.mxu0  ;;  %v800_v42 = vpop.f32.mrf.mxu1 }
 0x146   :  { %1316 = vst.msk [vmem:[%s2400_s3 + $0x54] sm:$0xf] %vm1294_vm3, %v1556_v37  ;;  %1348 = vst.msk [vmem:[%s2400_s3 + $0xd4] sm:$0xf] %vm1294_vm3, %v1588_v38  ;;  %v996_v43 = vmax.f32 %v932_v39, 0.0  ;;  %v1028_v44 = vmax.f32 %v964_v40, 0.0  ;;  %v864_v45 = vmul.f32 %v2006_v15, %v672_v41  ;;  %v896_v46 = vmul.f32 %v2006_v15, %v800_v42 }
 0x147   :  { %v674_v47 = vpop.f32.mrf.mxu0  ;;  %v802_v48 = vpop.f32.mrf.mxu1 }
 0x148   :  { %v1557_v49 = vpack.c.bf16 %v996_v43, %v996_v43  ;;  %v1589_v50 = vpack.c.bf16 %v1028_v44, %v1028_v44  ;;  %v933_v51 = vadd.f32 %v2011_v17, %v864_v45  ;;  %v965_v52 = vadd.f32 %v2011_v17, %v896_v46 }
 0x149   :  { %v677_v53 = vpop.f32.mrf.mxu0  ;;  %v805_v54 = vpop.f32.mrf.mxu1 }
 0x14a   :  { %1317 = vst.msk [vmem:[%s2400_s3 + $0x58] sm:$0xf] %vm1294_vm3, %v1557_v49  ;;  %1349 = vst.msk [vmem:[%s2400_s3 + $0xd8] sm:$0xf] %vm1294_vm3, %v1589_v50  ;;  %v997_v55 = vmax.f32 %v933_v51, 0.0  ;;  %v1029_v56 = vmax.f32 %v965_v52, 0.0  ;;  %v865_v57 = vmul.f32 %v2006_v15, %v677_v53  ;;  %v897_v58 = vmul.f32 %v2006_v15, %v805_v54 }
 0x14b   :  { %v679_v59 = vpop.f32.mrf.mxu0  ;;  %v807_v60 = vpop.f32.mrf.mxu1 }
 0x14c   :  { %v1558_v61 = vpack.c.bf16 %v997_v55, %v997_v55  ;;  %v1590_v62 = vpack.c.bf16 %v1029_v56, %v1029_v56  ;;  %v934_v63 = vadd.f32 %v2011_v17, %v865_v57  ;;  %v966_v0 = vadd.f32 %v2011_v17, %v897_v58 }
 0x14d   :  { %v680_v1 = vpop.f32.mrf.mxu0  ;;  %v808_v2 = vpop.f32.mrf.mxu1 }
 0x14e   :  { %1318 = vst.msk [vmem:[%s2400_s3 + $0x5c] sm:$0xf] %vm1294_vm3, %v1558_v61  ;;  %1350 = vst.msk [vmem:[%s2400_s3 + $0xdc] sm:$0xf] %vm1294_vm3, %v1590_v62  ;;  %v998_v3 = vmax.f32 %v934_v63, 0.0  ;;  %v1030_v4 = vmax.f32 %v966_v0, 0.0  ;;  %v866_v5 = vmul.f32 %v2006_v15, %v680_v1  ;;  %v898_v6 = vmul.f32 %v2006_v15, %v808_v2 }
 0x14f   :  { %v682_v7 = vpop.f32.mrf.mxu0  ;;  %v810_v8 = vpop.f32.mrf.mxu1 }
 0x150   :  { %v1559_v9 = vpack.c.bf16 %v998_v3, %v998_v3  ;;  %v1591_v10 = vpack.c.bf16 %v1030_v4, %v1030_v4  ;;  %v935_v11 = vadd.f32 %v2011_v17, %v866_v5  ;;  %v967_v12 = vadd.f32 %v2011_v17, %v898_v6 }
 0x151   :  { %v685_v13 = vpop.f32.mrf.mxu0  ;;  %v813_v14 = vpop.f32.mrf.mxu1 }
 0x152   :  { %1319 = vst.msk [vmem:[%s2400_s3 + $0x60] sm:$0xf] %vm1294_vm3, %v1559_v9  ;;  %1351 = vst.msk [vmem:[%s2400_s3 + $0xe0] sm:$0xf] %vm1294_vm3, %v1591_v10  ;;  %v999_v16 = vmax.f32 %v935_v11, 0.0  ;;  %v1031_v18 = vmax.f32 %v967_v12, 0.0  ;;  %v867_v19 = vmul.f32 %v2006_v15, %v685_v13  ;;  %v899_v20 = vmul.f32 %v2006_v15, %v813_v14 }
 0x153   :  { %v687_v21 = vpop.f32.mrf.mxu0  ;;  %v815_v22 = vpop.f32.mrf.mxu1 }
 0x154   :  { %v1560_v23 = vpack.c.bf16 %v999_v16, %v999_v16  ;;  %v1592_v24 = vpack.c.bf16 %v1031_v18, %v1031_v18  ;;  %v936_v25 = vadd.f32 %v2011_v17, %v867_v19  ;;  %v968_v26 = vadd.f32 %v2011_v17, %v899_v20 }
 0x155   :  { %v688_v27 = vpop.f32.mrf.mxu0  ;;  %v816_v28 = vpop.f32.mrf.mxu1 }
 0x156   :  { %1320 = vst.msk [vmem:[%s2400_s3 + $0x64] sm:$0xf] %vm1294_vm3, %v1560_v23  ;;  %1352 = vst.msk [vmem:[%s2400_s3 + $0xe4] sm:$0xf] %vm1294_vm3, %v1592_v24  ;;  %v1000_v29 = vmax.f32 %v936_v25, 0.0  ;;  %v1032_v30 = vmax.f32 %v968_v26, 0.0  ;;  %v868_v31 = vmul.f32 %v2006_v15, %v688_v27  ;;  %v900_v32 = vmul.f32 %v2006_v15, %v816_v28 }
 0x157   :  { %v690_v33 = vpop.f32.mrf.mxu0  ;;  %v818_v34 = vpop.f32.mrf.mxu1 }
 0x158   :  { %v1561_v35 = vpack.c.bf16 %v1000_v29, %v1000_v29  ;;  %v1593_v36 = vpack.c.bf16 %v1032_v30, %v1032_v30  ;;  %v937_v37 = vadd.f32 %v2011_v17, %v868_v31  ;;  %v969_v38 = vadd.f32 %v2011_v17, %v900_v32 }
 0x159   :  { %v693_v39 = vpop.f32.mrf.mxu0  ;;  %v821_v40 = vpop.f32.mrf.mxu1 }
 0x15a   :  { %1321 = vst.msk [vmem:[%s2400_s3 + $0x68] sm:$0xf] %vm1294_vm3, %v1561_v35  ;;  %1353 = vst.msk [vmem:[%s2400_s3 + $0xe8] sm:$0xf] %vm1294_vm3, %v1593_v36  ;;  %v1001_v41 = vmax.f32 %v937_v37, 0.0  ;;  %v1033_v42 = vmax.f32 %v969_v38, 0.0  ;;  %v869_v43 = vmul.f32 %v2006_v15, %v693_v39  ;;  %v901_v44 = vmul.f32 %v2006_v15, %v821_v40 }
 0x15b   :  { %v695_v45 = vpop.f32.mrf.mxu0  ;;  %v823_v46 = vpop.f32.mrf.mxu1 }
 0x15c   :  { %v1562_v47 = vpack.c.bf16 %v1001_v41, %v1001_v41  ;;  %v1594_v48 = vpack.c.bf16 %v1033_v42, %v1033_v42  ;;  %v938_v49 = vadd.f32 %v2011_v17, %v869_v43  ;;  %v970_v50 = vadd.f32 %v2011_v17, %v901_v44 }
 0x15d   :  { %v696_v51 = vpop.f32.mrf.mxu0  ;;  %v824_v52 = vpop.f32.mrf.mxu1 }
 0x15e   :  { %1322 = vst.msk [vmem:[%s2400_s3 + $0x6c] sm:$0xf] %vm1294_vm3, %v1562_v47  ;;  %1354 = vst.msk [vmem:[%s2400_s3 + $0xec] sm:$0xf] %vm1294_vm3, %v1594_v48  ;;  %v1002_v53 = vmax.f32 %v938_v49, 0.0  ;;  %v1034_v54 = vmax.f32 %v970_v50, 0.0  ;;  %v870_v55 = vmul.f32 %v2006_v15, %v696_v51  ;;  %v902_v56 = vmul.f32 %v2006_v15, %v824_v52 }
 0x15f   :  { %v698_v57 = vpop.f32.mrf.mxu0  ;;  %v826_v58 = vpop.f32.mrf.mxu1 }
 0x160   :  { %v1563_v59 = vpack.c.bf16 %v1002_v53, %v1002_v53  ;;  %v1595_v60 = vpack.c.bf16 %v1034_v54, %v1034_v54  ;;  %v939_v61 = vadd.f32 %v2011_v17, %v870_v55  ;;  %v971_v62 = vadd.f32 %v2011_v17, %v902_v56 }
 0x161   :  { %v701_v63 = vpop.f32.mrf.mxu0  ;;  %v829_v0 = vpop.f32.mrf.mxu1 }
 0x162   :  { %1323 = vst.msk [vmem:[%s2400_s3 + $0x70] sm:$0xf] %vm1294_vm3, %v1563_v59  ;;  %1355 = vst.msk [vmem:[%s2400_s3 + $0xf0] sm:$0xf] %vm1294_vm3, %v1595_v60  ;;  %v1003_v1 = vmax.f32 %v939_v61, 0.0  ;;  %v1035_v2 = vmax.f32 %v971_v62, 0.0  ;;  %v871_v3 = vmul.f32 %v2006_v15, %v701_v63  ;;  %v903_v4 = vmul.f32 %v2006_v15, %v829_v0 }
 0x163   :  { %v703_v5 = vpop.f32.mrf.mxu0  ;;  %v831_v6 = vpop.f32.mrf.mxu1 }
 0x164   :  { %v1564_v7 = vpack.c.bf16 %v1003_v1, %v1003_v1  ;;  %v1596_v8 = vpack.c.bf16 %v1035_v2, %v1035_v2  ;;  %v940_v9 = vadd.f32 %v2011_v17, %v871_v3  ;;  %v972_v10 = vadd.f32 %v2011_v17, %v903_v4 }
 0x165   :  { %v704_v11 = vpop.f32.mrf.mxu0  ;;  %v832_v12 = vpop.f32.mrf.mxu1 }
 0x166   :  { %1324 = vst.msk [vmem:[%s2400_s3 + $0x74] sm:$0xf] %vm1294_vm3, %v1564_v7  ;;  %1356 = vst.msk [vmem:[%s2400_s3 + $0xf4] sm:$0xf] %vm1294_vm3, %v1596_v8  ;;  %v1004_v13 = vmax.f32 %v940_v9, 0.0  ;;  %v1036_v14 = vmax.f32 %v972_v10, 0.0  ;;  %v872_v16 = vmul.f32 %v2006_v15, %v704_v11  ;;  %v904_v18 = vmul.f32 %v2006_v15, %v832_v12 }
 0x167   :  { %v706_v19 = vpop.f32.mrf.mxu0  ;;  %v834_v20 = vpop.f32.mrf.mxu1 }
 0x168   :  { %v1565_v21 = vpack.c.bf16 %v1004_v13, %v1004_v13  ;;  %v1597_v22 = vpack.c.bf16 %v1036_v14, %v1036_v14  ;;  %v941_v23 = vadd.f32 %v2011_v17, %v872_v16  ;;  %v973_v24 = vadd.f32 %v2011_v17, %v904_v18 }
 0x16a   :  { %1325 = vst.msk [vmem:[%s2400_s3 + $0x78] sm:$0xf] %vm1294_vm3, %v1565_v21  ;;  %1357 = vst.msk [vmem:[%s2400_s3 + $0xf8] sm:$0xf] %vm1294_vm3, %v1597_v22  ;;  %v1005_v25 = vmax.f32 %v941_v23, 0.0  ;;  %v1037_v15 = vmax.f32 %v973_v24, 0.0 }
 0x16c   :  { %v1566_v26 = vpack.c.bf16 %v1005_v25, %v1005_v25  ;;  %v1598_v27 = vpack.c.bf16 %v1037_v15, %v1037_v15 }
 0x16e   :  { %1326 = vst.msk [vmem:[%s2400_s3 + $0x7c] sm:$0xf] %vm1294_vm3, %v1566_v26  ;;  %1358 = vst.msk [vmem:[%s2400_s3 + $0xfc] sm:$0xf] %vm1294_vm3, %v1598_v27 }

</bundles_post_ra>
